<compile_context>
chip_gen: v6e
topology: v6e:2x2x1
jax: 0.10.0
libtpu: 0.0.40
codegen_flags: <defaults>
</compile_context>

<pallas_src>
import functools

import jax
import jax.numpy as jnp
from jax.experimental import pallas as pl
from jax.experimental.pallas import tpu as pltpu

_PAD_SENTINEL = 1e30   # large but FINITE (inf would give 0*inf = NaN paths)


def _round_up(x, mult):
    return ((x + mult - 1) // mult) * mult


def _default_n_par():
    """2 grid-parallel shards only on multi-TensorCore chips."""
    try:
        kind = jax.devices()[0].device_kind.lower()
    except Exception:
        return 1
    if "v7" in kind or "7x" in kind:       # v7x: 2 TCs per chip
        return 2
    if "v4" in kind or "v5p" in kind:      # megacore generations
        return 2
    return 1                               # v5e / v6e: single TC


def _dsh_loss_kernel(u_ref, y_ref, Usq_ref, U_ref, Y_ref, out_ref,
                     acc_ref, usq_ref, *, m):
    j = pl.program_id(1)                   # reduction axis over num_train tiles

    @pl.when(j == 0)
    def _init():
        acc_ref[...] = jnp.zeros_like(acc_ref)
        uf = u_ref[...]
        usq_ref[...] = jnp.sum(uf * uf, axis=1, keepdims=True)     # (B, 1)

    u = u_ref[...]                         # (B, bit)   f32, resident
    yb = y_ref[...]                        # (B, C)     f32, resident
    Ut = U_ref[...]                        # (bit, Tn)  lane-dense bank tile
    Yt = Y_ref[...]                        # (C, Tn)    lane-dense label tile

    # Natural (B, K) @ (K, N) contractions -> MXU consumes tiles as-is.
    cross = jnp.dot(u, Ut, preferred_element_type=jnp.float32)      # (B, Tn)
    inner = jnp.dot(yb, Yt, preferred_element_type=jnp.float32)     # (B, Tn)

    # ||u - U||^2 = ||u||^2 + ||U||^2 - 2 u.U ; clamp >= 0 (cancellation guard).
    # Padded tail columns carry Usq = 1e30 -> dist huge, inner == 0, so the
    # select below yields max(m - dist, 0) == 0 exactly: zero contribution.
    dist = jnp.maximum(usq_ref[...] + Usq_ref[...] - 2.0 * cross, 0.0)

    loss_tile = 0.5 * jnp.where(inner == 0.0,
                                jnp.maximum(m - dist, 0.0),
                                dist)

    acc_ref[...] += loss_tile              # dense, lane-aligned accumulation

    @pl.when(j == pl.num_programs(1) - 1)
    def _finalize():
        # Single cross-lane/sublane reduction per core -> lane-dense (1, 128).
        out_ref[...] = jnp.broadcast_to(jnp.sum(acc_ref[...]), out_ref.shape)


def init_dsh_state(num_train, bit, n_class, *, tile_n=4096, n_par=None):
    """Persistent, padded, transposed DSH state: (U_t, Y_t, Usq, meta)."""
    if n_par is None:
        n_par = _default_n_par()
    # Clamp tile_n so tiny banks don't over-pad; keep it a multiple of 128.
    tile_n = max(128, min(tile_n, _round_up(-(-num_train // n_par), 128)))
    chunk = n_par * tile_n
    n_pad = _round_up(num_train, chunk)

    U_t = jnp.zeros((bit, n_pad), jnp.float32)
    Y_t = jnp.zeros((n_class, n_pad), jnp.float32)
    col = jnp.arange(n_pad)
    Usq = jnp.where(col < num_train, 0.0, _PAD_SENTINEL)[None, :].astype(jnp.float32)
    meta = dict(num_train=num_train, tile_n=tile_n, n_par=n_par)
    return U_t, Y_t, Usq, meta


@functools.partial(jax.jit,
                   static_argnames=("m", "alpha", "num_train", "tile_n", "n_par"),
                   donate_argnums=(3, 4, 5))   # in-place update of the banks
def dsh_loss(u, y, ind, U_t, Y_t, Usq, *, m, alpha, num_train, tile_n, n_par):
    """Returns (scalar loss, U_t, Y_t, Usq) with the banks updated in place."""
    B, bit = u.shape
    _, C = y.shape
    n_pad = U_t.shape[1]
    tiles_per_core = n_pad // (n_par * tile_n)

    u32 = u.astype(jnp.float32)
    y32 = y.astype(jnp.float32)

    # self.U[ind,:] = u ; self.Y[ind,:] = y  (transposed column scatter), plus
    # an incremental update of the row-norm cache (only B columns touched).
    U_t = U_t.at[:, ind].set(u32.T)
    Y_t = Y_t.at[:, ind].set(y32.T)
    Usq = Usq.at[0, ind].set(jnp.sum(u32 * u32, axis=1))

    kernel = functools.partial(_dsh_loss_kernel, m=float(m))

    partials = pl.pallas_call(
        kernel,
        out_shape=jax.ShapeDtypeStruct((n_par, 128), jnp.float32),
        grid_spec=pltpu.PrefetchScalarGridSpec(
            num_scalar_prefetch=0,
            grid=(n_par, tiles_per_core),
            in_specs=[
                pl.BlockSpec((B, bit), lambda p, j: (0, 0)),        # u (resident)
                pl.BlockSpec((B, C), lambda p, j: (0, 0)),          # y (resident)
                pl.BlockSpec((1, tile_n),                           # ||U||^2 tile
                             lambda p, j: (0, p * tiles_per_core + j)),
                pl.BlockSpec((bit, tile_n),                         # U bank tile
                             lambda p, j: (0, p * tiles_per_core + j)),
                pl.BlockSpec((C, tile_n),                           # Y bank tile
                             lambda p, j: (0, p * tiles_per_core + j)),
            ],
            out_specs=pl.BlockSpec((1, 128), lambda p, j: (p, 0)),  # per-core sum
            scratch_shapes=[
                pltpu.VMEM((B, tile_n), jnp.float32),   # dense loss accumulator
                pltpu.VMEM((B, 1), jnp.float32),        # hoisted ||u||^2
            ],
        ),
        compiler_params=pltpu.CompilerParams(
            # num_train shards across TensorCores where they exist (v7x),
            # sequential reduction within each shard. VMEM footprint is
            # ~1-2 MiB at tile_n=4096 -> no explicit vmem_limit needed.
            dimension_semantics=("parallel", "arbitrary")),
    )(u32, y32, Usq, U_t, Y_t)

    loss1 = jnp.sum(partials[:, 0]) / float(B * num_train)
    # Matches the given reference: alpha * (1 - u.sign()).abs().mean()
    loss2 = alpha * jnp.mean(jnp.abs(1.0 - jnp.sign(u32)))
    return loss1 + loss2, U_t, Y_t, Usq


if __name__ == "__main__":
    # Shapes consistent with the module:
    #   config = {num_train: 2000, n_class: 10, alpha: 0.01}, bit = 16
    num_train, n_class, bit, batch = 2000, 10, 16, 8
    alpha = 0.01
    m = 2 * bit

    U_t, Y_t, Usq, meta = init_dsh_state(num_train, bit, n_class)

    key = jax.random.PRNGKey(0)
    ku, ky, ki = jax.random.split(key, 3)
    u = jax.random.normal(ku, (batch, bit), jnp.float32)            # hash codes
    labels = jax.random.randint(ky, (batch,), 0, n_class)
    y = jax.nn.one_hot(labels, n_class, dtype=jnp.float32)          # one-hot labels
    ind = jax.random.permutation(ki, num_train)[:batch]             # unique indices

    loss, U_t, Y_t, Usq = dsh_loss(u, y, ind, U_t, Y_t, Usq,
                                   m=m, alpha=alpha, **meta)
    loss = jax.block_until_ready(loss)

    # Pure-JAX reference of the PyTorch forward (built independently).
    U_ref = jnp.zeros((num_train, bit), jnp.float32).at[ind].set(u)
    Y_ref = jnp.zeros((num_train, n_class), jnp.float32).at[ind].set(y)
    dist = jnp.sum((u[:, None, :] - U_ref[None, :, :]) ** 2, axis=2)
    ydis = (y @ Y_ref.T == 0).astype(jnp.float32)
    ref = (jnp.mean((1.0 - ydis) * 0.5 * dist
                    + ydis * 0.5 * jnp.maximum(m - dist, 0.0))
           + alpha * jnp.mean(jnp.abs(1.0 - jnp.sign(u))))
    ref = float(ref)
    got = float(loss)
    assert abs(got - ref) <= 1e-3 * (1.0 + abs(ref)), (got, ref)

    print("KERNEL_OK")
</pallas_src>

<mosaic_0001>
module attributes {stable_mosaic.version = 11 : i64} {
  func.func @_dsh_loss_kernel(%arg0: i32, %arg1: i32, %arg2: memref<8x16xf32, #tpu.memory_space<vmem>>, %arg3: memref<8x10xf32, #tpu.memory_space<vmem>>, %arg4: memref<1x2048xf32, #tpu.memory_space<vmem>>, %arg5: memref<16x2048xf32, #tpu.memory_space<vmem>>, %arg6: memref<10x2048xf32, #tpu.memory_space<vmem>>, %arg7: memref<1x128xf32, #tpu.memory_space<vmem>>, %arg8: memref<8x2048xf32, #tpu.memory_space<vmem>>, %arg9: memref<8x1xf32, #tpu.memory_space<vmem>>) attributes {dimension_semantics = [#tpu.dimension_semantics<parallel>, #tpu.dimension_semantics<arbitrary>], iteration_bounds = array<i64: 1, 1>, scalar_prefetch = 0 : i64, scratch_operands = 2 : i64, tpu.core_type = #tpu.core_type<tc>, window_params = [{pipeline_mode = #tpu.pipeline_mode<synchronous>, transform_indices = @transform_0, window_bounds = array<i64: 8, 16>}, {pipeline_mode = #tpu.pipeline_mode<synchronous>, transform_indices = @transform_1, window_bounds = array<i64: 8, 10>}, {transform_indices = @transform_2, window_bounds = array<i64: 1, 2048>}, {transform_indices = @transform_3, window_bounds = array<i64: 16, 2048>}, {transform_indices = @transform_4, window_bounds = array<i64: 10, 2048>}, {transform_indices = @transform_5, window_bounds = array<i64: 1, 128>}]} {
    %c0_i32 = arith.constant 0 : i32
    %0 = arith.cmpi eq, %arg1, %c0_i32 : i32
    %1 = arith.extui %0 : i1 to i32
    %c0_i32_0 = arith.constant 0 : i32
    %2 = arith.cmpi ne, %1, %c0_i32_0 : i32
    scf.if %2 {
      %cst_25 = arith.constant 0.000000e+00 : f32
      %34 = vector.broadcast %cst_25 : f32 to vector<8x2048xf32>
      %c0_26 = arith.constant 0 : index
      %c0_27 = arith.constant 0 : index
      %35 = vector.load %arg8[%c0_26, %c0_27] : memref<8x2048xf32, #tpu.memory_space<vmem>>, vector<8x2048xf32>
      tpu.vector_store %arg8[%c0_26, %c0_27], %34 {strides = array<i32>} : memref<8x2048xf32, #tpu.memory_space<vmem>>, vector<8x2048xf32>,
      %c0_28 = arith.constant 0 : index
      %c0_29 = arith.constant 0 : index
      %36 = vector.load %arg2[%c0_28, %c0_29] : memref<8x16xf32, #tpu.memory_space<vmem>>, vector<8x16xf32>
      %37 = arith.mulf %36, %36 : vector<8x16xf32>
      %cst_30 = arith.constant dense<0.000000e+00> : vector<8xf32>
      %38 = vector.multi_reduction <add>, %37, %cst_30 [1] : vector<8x16xf32> to vector<8xf32>
      %39 = vector.shape_cast %38 : vector<8xf32> to vector<8x1xf32>
      %c0_31 = arith.constant 0 : index
      %c0_32 = arith.constant 0 : index
      %40 = vector.load %arg9[%c0_31, %c0_32] : memref<8x1xf32, #tpu.memory_space<vmem>>, vector<8x1xf32>
      tpu.vector_store %arg9[%c0_31, %c0_32], %39 {strides = array<i32>} : memref<8x1xf32, #tpu.memory_space<vmem>>, vector<8x1xf32>,
    } else {
    }
    %c0 = arith.constant 0 : index
    %c0_1 = arith.constant 0 : index
    %3 = vector.load %arg2[%c0, %c0_1] : memref<8x16xf32, #tpu.memory_space<vmem>>, vector<8x16xf32>
    %c0_2 = arith.constant 0 : index
    %c0_3 = arith.constant 0 : index
    %4 = vector.load %arg3[%c0_2, %c0_3] : memref<8x10xf32, #tpu.memory_space<vmem>>, vector<8x10xf32>
    %c0_4 = arith.constant 0 : index
    %c0_5 = arith.constant 0 : index
    %5 = vector.load %arg5[%c0_4, %c0_5] : memref<16x2048xf32, #tpu.memory_space<vmem>>, vector<16x2048xf32>
    %c0_6 = arith.constant 0 : index
    %c0_7 = arith.constant 0 : index
    %6 = vector.load %arg6[%c0_6, %c0_7] : memref<10x2048xf32, #tpu.memory_space<vmem>>, vector<10x2048xf32>
    %cst = arith.constant dense<0.000000e+00> : vector<8x2048xf32>
    %7 = tpu.matmul %3, %5, %cst {dimension_numbers = #tpu.dot_dimension_numbers<[1], [0], [0], [1], [0, 0, 1, 1], [], []>} : vector<8x16xf32>, vector<16x2048xf32>, vector<8x2048xf32> -> vector<8x2048xf32>
    %cst_8 = arith.constant dense<0.000000e+00> : vector<8x2048xf32>
    %8 = tpu.matmul %4, %6, %cst_8 {dimension_numbers = #tpu.dot_dimension_numbers<[1], [0], [0], [1], [0, 0, 1, 1], [], []>} : vector<8x10xf32>, vector<10x2048xf32>, vector<8x2048xf32> -> vector<8x2048xf32>
    %c0_9 = arith.constant 0 : index
    %c0_10 = arith.constant 0 : index
    %9 = vector.load %arg9[%c0_9, %c0_10] : memref<8x1xf32, #tpu.memory_space<vmem>>, vector<8x1xf32>
    %c0_11 = arith.constant 0 : index
    %c0_12 = arith.constant 0 : index
    %10 = vector.load %arg4[%c0_11, %c0_12] : memref<1x2048xf32, #tpu.memory_space<vmem>>, vector<1x2048xf32>
    %11 = vector.broadcast %9 : vector<8x1xf32> to vector<8x2048xf32>
    %12 = vector.broadcast %10 : vector<1x2048xf32> to vector<8x2048xf32>
    %13 = arith.addf %11, %12 : vector<8x2048xf32>
    %cst_13 = arith.constant 2.000000e+00 : f32
    %14 = vector.broadcast %cst_13 : f32 to vector<8x2048xf32>
    %15 = arith.mulf %14, %7 : vector<8x2048xf32>
    %16 = arith.subf %13, %15 : vector<8x2048xf32>
    %cst_14 = arith.constant 0.000000e+00 : f32
    %17 = vector.broadcast %cst_14 : f32 to vector<8x2048xf32>
    %18 = arith.maximumf %16, %17 : vector<8x2048xf32>
    %cst_15 = arith.constant 0.000000e+00 : f32
    %19 = vector.broadcast %cst_15 : f32 to vector<8x2048xf32>
    %20 = arith.cmpf oeq, %8, %19 : vector<8x2048xf32>
    %cst_16 = arith.constant 3.200000e+01 : f32
    %21 = vector.broadcast %cst_16 : f32 to vector<8x2048xf32>
    %22 = arith.subf %21, %18 : vector<8x2048xf32>
    %cst_17 = arith.constant 0.000000e+00 : f32
    %23 = vector.broadcast %cst_17 : f32 to vector<8x2048xf32>
    %24 = arith.maximumf %22, %23 : vector<8x2048xf32>
    %25 = arith.select %20, %24, %18 : vector<8x2048xi1>, vector<8x2048xf32>
    %cst_18 = arith.constant 5.000000e-01 : f32
    %26 = vector.broadcast %cst_18 : f32 to vector<8x2048xf32>
    %27 = arith.mulf %26, %25 : vector<8x2048xf32>
    %c0_19 = arith.constant 0 : index
    %c0_20 = arith.constant 0 : index
    %28 = vector.load %arg8[%c0_19, %c0_20] : memref<8x2048xf32, #tpu.memory_space<vmem>>, vector<8x2048xf32>
    %29 = arith.addf %28, %27 : vector<8x2048xf32>
    %c0_21 = arith.constant 0 : index
    %c0_22 = arith.constant 0 : index
    %30 = vector.load %arg8[%c0_21, %c0_22] : memref<8x2048xf32, #tpu.memory_space<vmem>>, vector<8x2048xf32>
    tpu.vector_store %arg8[%c0_21, %c0_22], %29 {strides = array<i32>} : memref<8x2048xf32, #tpu.memory_space<vmem>>, vector<8x2048xf32>,
    %c0_i32_23 = arith.constant 0 : i32
    %31 = arith.cmpi eq, %arg1, %c0_i32_23 : i32
    %32 = arith.extui %31 : i1 to i32
    %c0_i32_24 = arith.constant 0 : i32
    %33 = arith.cmpi ne, %32, %c0_i32_24 : i32
    scf.if %33 {
      %c0_25 = arith.constant 0 : index
      %c0_26 = arith.constant 0 : index
      %34 = vector.load %arg8[%c0_25, %c0_26] : memref<8x2048xf32, #tpu.memory_space<vmem>>, vector<8x2048xf32>
      %35 = vector.shape_cast %34 : vector<8x2048xf32> to vector<1x8x2048xf32>
      %cst_27 = arith.constant dense<0.000000e+00> : vector<1xf32>
      %36 = vector.multi_reduction <add>, %35, %cst_27 [1, 2] : vector<1x8x2048xf32> to vector<1xf32>
      %37 = vector.shape_cast %36 : vector<1xf32> to vector<1x1x1xf32>
      %38 = vector.extract %37[0, 0, 0] : f32 from vector<1x1x1xf32>
      %39 = vector.broadcast %38 : f32 to vector<1x128xf32>
      %c0_28 = arith.constant 0 : index
      %c0_29 = arith.constant 0 : index
      %40 = vector.load %arg7[%c0_28, %c0_29] : memref<1x128xf32, #tpu.memory_space<vmem>>, vector<1x128xf32>
      tpu.vector_store %arg7[%c0_28, %c0_29], %39 {strides = array<i32>} : memref<1x128xf32, #tpu.memory_space<vmem>>, vector<1x128xf32>,
    } else {
    }
    return
  }
  func.func @transform_0(%arg0: i32, %arg1: i32) -> (i32, i32) {
    %c0_i32 = arith.constant 0 : i32
    %c0_i32_0 = arith.constant 0 : i32
    %c0_i32_1 = arith.constant 0 : i32
    return %c0_i32, %c0_i32_0 : i32, i32
  }
  func.func @transform_1(%arg0: i32, %arg1: i32) -> (i32, i32) {
    %c0_i32 = arith.constant 0 : i32
    %c0_i32_0 = arith.constant 0 : i32
    %c0_i32_1 = arith.constant 0 : i32
    return %c0_i32, %c0_i32_0 : i32, i32
  }
  func.func @transform_2(%arg0: i32, %arg1: i32) -> (i32, i32) {
    %c1_i32 = arith.constant 1 : i32
    %0 = arith.muli %arg0, %c1_i32 : i32
    %1 = arith.addi %0, %arg1 : i32
    %c0_i32 = arith.constant 0 : i32
    %c0_i32_0 = arith.constant 0 : i32
    return %c0_i32, %1 : i32, i32
  }
  func.func @transform_3(%arg0: i32, %arg1: i32) -> (i32, i32) {
    %c1_i32 = arith.constant 1 : i32
    %0 = arith.muli %arg0, %c1_i32 : i32
    %1 = arith.addi %0, %arg1 : i32
    %c0_i32 = arith.constant 0 : i32
    %c0_i32_0 = arith.constant 0 : i32
    return %c0_i32, %1 : i32, i32
  }
  func.func @transform_4(%arg0: i32, %arg1: i32) -> (i32, i32) {
    %c1_i32 = arith.constant 1 : i32
    %0 = arith.muli %arg0, %c1_i32 : i32
    %1 = arith.addi %0, %arg1 : i32
    %c0_i32 = arith.constant 0 : i32
    %c0_i32_0 = arith.constant 0 : i32
    return %c0_i32, %1 : i32, i32
  }
  func.func @transform_5(%arg0: i32, %arg1: i32) -> (i32, i32) {
    %c0_i32 = arith.constant 0 : i32
    %c0_i32_0 = arith.constant 0 : i32
    return %arg0, %c0_i32 : i32, i32
  }
}

</mosaic_0001>

<bundles_post_ra>
// kernel: dsh_loss.1
= control target key start
LH: loop header
LB: loop body
LE: loop exit
PB: predicated region body
PF: predicated region fallthrough
CT: control target
= control target key end

     0   :  { %vm105_vm0 = vcmask 130048   ;;  %v1753_v3 = vmov 0.0   ;;  %vm753_vm1 = vcmask 1041408   ;;  %vm749_vm2 = vcmask 80896   ;;  %s2163_s0 = inlined_call_operand.vmem [shape: f32[8,16], index: 0, kind: input, shape index: {}]   ;;  %s2164_s3 = inlined_call_operand.vmem [shape: f32[16,2048], index: 3, kind: input, shape index: {}]   ;;  %s2165_s4 = inlined_call_operand.vmem [shape: f32[10,2048], index: 4, kind: input, shape index: {}]   ;;  %s2166_s1 = inlined_call_operand.vmem [shape: f32[8,10], index: 1, kind: input, shape index: {}]   ;;  %s2167_s2 = inlined_call_operand.vmem [shape: f32[1,2048], index: 2, kind: input, shape index: {}]   ;;  %s2168_s5 = inlined_call_operand.vmem [shape: f32[1,128], index: 5, kind: output, shape index: {}]  }
   0x1   :  { %v1788_v0 = vld [vmem:[%s2163_s0] sm:$0xff]  ;;  %v130_v1 = vld [vmem:[%s2164_s3 + $0x88] sm:$0xff]  ;;  %v132_v2 = vld [vmem:[%s2164_s3 + $0x98] sm:$0xff]  ;;  %245 = vmatprep.mubr.f32.mxu0 %v1753_v3  ;;  %316 = vmatprep.mubr.f32.mxu1 %v1753_v3  ;;  %vm109_vm3 = vcmask 7168  }
   0x2   :  { %v104_v4 = vmul.f32 %v1788_v0, %v1788_v0  ;;  %209 = vmatprep.subr.mxu0 %v130_v1  ;;  %280 = vmatprep.subr.mxu1 %v132_v2  ;;  %v129_v5 = vld [vmem:[%s2164_s3 + $0x80] sm:$0xff]  ;;  %v131_v6 = vld [vmem:[%s2164_s3 + $0x90] sm:$0xff]  ;;  %v114_v7 = vld [vmem:[%s2164_s3 + $0x8] sm:$0xff] }
   0x3   :  { %210 = vmatpush1.msra.mxu0 %v129_v5  ;;  %281 = vmatpush1.msra.mxu1 %v131_v6  ;;  %v116_v8 = vld [vmem:[%s2164_s3 + $0x18] sm:$0xff]  ;;  %v113_v9 = vld [vmem:[%s2164_s3] sm:$0xff]  ;;  %v115_v10 = vld [vmem:[%s2164_s3 + $0x10] sm:$0xff]  ;;  %v1754_v6 = vmov 0  }
   0x4   :  { %v106_v11 = vsel %vm105_vm0, %v104_v4, 0.0  ;;  %211 = vmatprep.subr.mxu0 %v114_v7  ;;  %282 = vmatprep.subr.mxu1 %v116_v8  ;;  %v134_v12 = vld [vmem:[%s2164_s3 + $0xa8] sm:$0xff]  ;;  %v136_v13 = vld [vmem:[%s2164_s3 + $0xb8] sm:$0xff]  ;;  %v133_v14 = vld [vmem:[%s2164_s3 + $0xa0] sm:$0xff] }
   0x5   :  { %107 = vadd.xlane.f32.xlu0 %v106_v11  ;;  %212 = vmatpush1.msra.mxu0 %v113_v9  ;;  %v135_v15 = vld [vmem:[%s2164_s3 + $0xb0] sm:$0xff]  ;;  %v118_v16 = vld [vmem:[%s2164_s3 + $0x28] sm:$0xff]  ;;  %v120_v17 = vld [vmem:[%s2164_s3 + $0x38] sm:$0xff] }
   0x6   :  { %283 = vmatpush1.msra.mxu1 %v115_v10  ;;  %1716 = vmatmul.mubr.msk.f32.vlgmr.msra.gmra.mxu0 %vm105_vm0, %v1788_v0  ;;  %v117_v18 = vld [vmem:[%s2164_s3 + $0x20] sm:$0xff]  ;;  %v119_v19 = vld [vmem:[%s2164_s3 + $0x30] sm:$0xff]  ;;  %v138_v20 = vld [vmem:[%s2164_s3 + $0xc8] sm:$0xff] }
   0x7   :  { %1717 = vmatmul.mubr.msk.f32.vlgmr.msra.gmra.mxu1 %vm105_vm0, %v1788_v0  ;;  %351 = vmatprep.subr.mxu0 %v134_v12  ;;  %v140_v21 = vld [vmem:[%s2164_s3 + $0xd8] sm:$0xff]  ;;  %v137_v22 = vld [vmem:[%s2164_s3 + $0xc0] sm:$0xff]  ;;  %v139_v23 = vld [vmem:[%s2164_s3 + $0xd0] sm:$0xff] }
   0x8   :  { %422 = vmatprep.subr.mxu1 %v136_v13  ;;  %352 = vmatpush1.msra.mxu0 %v133_v14  ;;  %v122_v24 = vld [vmem:[%s2164_s3 + $0x48] sm:$0xff]  ;;  %v124_v25 = vld [vmem:[%s2164_s3 + $0x58] sm:$0xff]  ;;  %v121_v26 = vld [vmem:[%s2164_s3 + $0x40] sm:$0xff] }
   0x9   :  { %423 = vmatpush1.msra.mxu1 %v135_v15  ;;  %353 = vmatprep.subr.mxu0 %v118_v16  ;;  %v123_v27 = vld [vmem:[%s2164_s3 + $0x50] sm:$0xff]  ;;  %v142_v28 = vld [vmem:[%s2164_s3 + $0xe8] sm:$0xff]  ;;  %v144_v29 = vld [vmem:[%s2164_s3 + $0xf8] sm:$0xff] }
   0xa   :  { %424 = vmatprep.subr.mxu1 %v120_v17  ;;  %354 = vmatpush1.msra.mxu0 %v117_v18  ;;  %v141_v30 = vld [vmem:[%s2164_s3 + $0xe0] sm:$0xff]  ;;  %v143_v31 = vld [vmem:[%s2164_s3 + $0xf0] sm:$0xff]  ;;  %v126_v32 = vld [vmem:[%s2164_s3 + $0x68] sm:$0xff] }
   0xb   :  { %387 = vmatprep.mubr.f32.mxu0 %v1753_v3  ;;  %425 = vmatpush1.msra.mxu1 %v119_v19  ;;  %v128_v33 = vld [vmem:[%s2164_s3 + $0x78] sm:$0xff]  ;;  %v125_v34 = vld [vmem:[%s2164_s3 + $0x60] sm:$0xff]  ;;  %v127_v35 = vld [vmem:[%s2164_s3 + $0x70] sm:$0xff] }
   0xc   :  { %458 = vmatprep.mubr.f32.mxu1 %v1753_v3  ;;  %1718 = vmatmul.mubr.msk.f32.vlgmr.msra.gmra.mxu0 %vm105_vm0, %v1788_v0  ;;  %v162_v36 = vld [vmem:[%s2165_s4 + $0x88] sm:$0x3]  ;;  %v164_v37 = vld [vmem:[%s2165_s4 + $0x98] sm:$0x3]  ;;  %v161_v38 = vld [vmem:[%s2165_s4 + $0x80] sm:$0x3] }
   0xd   :  { %1719 = vmatmul.mubr.msk.f32.vlgmr.msra.gmra.mxu1 %vm105_vm0, %v1788_v0  ;;  %493 = vmatprep.subr.mxu0 %v138_v20  ;;  %v163_v39 = vld [vmem:[%s2165_s4 + $0x90] sm:$0x3]  ;;  %v146_v40 = vld [vmem:[%s2165_s4 + $0x8] sm:$0xff]  ;;  %v148_v41 = vld [vmem:[%s2165_s4 + $0x18] sm:$0xff]  ;;  %v1380_v20 = vlaneseq }
   0xe   :  { %564 = vmatprep.subr.mxu1 %v140_v21  ;;  %494 = vmatpush1.msra.mxu0 %v137_v22  ;;  %v145_v42 = vld [vmem:[%s2165_s4] sm:$0xff]  ;;  %v147_v43 = vld [vmem:[%s2165_s4 + $0x10] sm:$0xff]  ;;  %v166_v45 = vld [vmem:[%s2165_s4 + $0xa8] sm:$0x3] }
   0xf   :  { %565 = vmatpush1.msra.mxu1 %v139_v23  ;;  %495 = vmatprep.subr.mxu0 %v122_v24  ;;  %v1944_v44 = vld [vmem:[%s2166_s1] sm:$0xff]  ;;  %v168_v46 = vld [vmem:[%s2165_s4 + $0xb8] sm:$0x3]  ;;  %v167_v48 = vld [vmem:[%s2165_s4 + $0xb0] sm:$0x3]  ;;  %v1381_v23 = vshrl.u32 %v1380_v20, 7 }
  0x10   :  { %566 = vmatprep.subr.mxu1 %v124_v25  ;;  %496 = vmatpush1.msra.mxu0 %v121_v26  ;;  %v165_v47 = vld [vmem:[%s2165_s4 + $0xa0] sm:$0x3]  ;;  %v150_v49 = vld [vmem:[%s2165_s4 + $0x28] sm:$0xff]  ;;  %v152_v50 = vld [vmem:[%s2165_s4 + $0x38] sm:$0xff] }
  0x11   :  { %529 = vmatprep.mubr.f32.mxu0 %v1753_v3  ;;  %567 = vmatpush1.msra.mxu1 %v123_v27  ;;  %v149_v51 = vld [vmem:[%s2165_s4 + $0x20] sm:$0xff]  ;;  %v151_v52 = vld [vmem:[%s2165_s4 + $0x30] sm:$0xff]  ;;  %v170_v53 = vld [vmem:[%s2165_s4 + $0xc8] sm:$0x3]  ;;  %v1382_v26 = vsub.s32 0, %v1381_v23 }
  0x12   :  { %600 = vmatprep.mubr.f32.mxu1 %v1753_v3  ;;  %1720 = vmatmul.mubr.msk.f32.vlgmr.msra.gmra.mxu0 %vm105_vm0, %v1788_v0  ;;  %v172_v54 = vld [vmem:[%s2165_s4 + $0xd8] sm:$0x3]  ;;  %v169_v55 = vld [vmem:[%s2165_s4 + $0xc0] sm:$0x3]  ;;  %v171_v56 = vld [vmem:[%s2165_s4 + $0xd0] sm:$0x3] }
  0x13   :  { %1721 = vmatmul.mubr.msk.f32.vlgmr.msra.gmra.mxu1 %vm105_vm0, %v1788_v0  ;;  %635 = vmatprep.subr.mxu0 %v142_v28  ;;  %v154_v57 = vld [vmem:[%s2165_s4 + $0x48] sm:$0xff]  ;;  %v156_v58 = vld [vmem:[%s2165_s4 + $0x58] sm:$0xff]  ;;  %v153_v59 = vld [vmem:[%s2165_s4 + $0x40] sm:$0xff]  ;;  %v1386_v28 = vsub.s32 1, %v1381_v23 }
  0x14   :  { %706 = vmatprep.subr.mxu1 %v144_v29  ;;  %636 = vmatpush1.msra.mxu0 %v141_v30  ;;  %v155_v60 = vld [vmem:[%s2165_s4 + $0x50] sm:$0xff]  ;;  %v174_v61 = vld [vmem:[%s2165_s4 + $0xe8] sm:$0x3]  ;;  %v176_v62 = vld [vmem:[%s2165_s4 + $0xf8] sm:$0x3]  ;;  %v1390_v29 = vsub.s32 2, %v1381_v23 }
  0x15   :  { %707 = vmatpush1.msra.mxu1 %v143_v31  ;;  %637 = vmatprep.subr.mxu0 %v126_v32  ;;  %v173_v63 = vld [vmem:[%s2165_s4 + $0xe0] sm:$0x3]  ;;  %v158_v1 = vld [vmem:[%s2165_s4 + $0x68] sm:$0xff]  ;;  %v160_v2 = vld [vmem:[%s2165_s4 + $0x78] sm:$0xff]  ;;  %v1394_v30 = vsub.s32 3, %v1381_v23  ;;  %v1398_v31 = vsub.s32 4, %v1381_v23 }
  0x16   :  { %708 = vmatprep.subr.mxu1 %v128_v33  ;;  %638 = vmatpush1.msra.mxu0 %v125_v34  ;;  %v157_v4 = vld [vmem:[%s2165_s4 + $0x60] sm:$0xff]  ;;  %v159_v5 = vld [vmem:[%s2165_s4 + $0x70] sm:$0xff]  ;;  %v1402_v32 = vsub.s32 5, %v1381_v23  ;;  %v1406_v33 = vsub.s32 6, %v1381_v23  ;;  %v1410_v34 = vsub.s32 7, %v1381_v23 }
  0x17   :  { %671 = vmatprep.mubr.f32.mxu0 %v1753_v3  ;;  %709 = vmatpush1.msra.mxu1 %v127_v35  ;;  %v1371_v27 = vld [vmem:[%s2167_s2] sm:$0xff] }
  0x18   :  { %742 = vmatprep.mubr.f32.mxu1 %v1753_v3  ;;  %1722 = vmatmul.mubr.msk.f32.vlgmr.msra.gmra.mxu0 %vm105_vm0, %v1788_v0 }
  0x19   :  { %1723 = vmatmul.mubr.msk.f32.vlgmr.msra.gmra.mxu1 %vm105_vm0, %v1788_v0  ;;  %1724 = vmatprep.subr.msk.mxu0 %vm753_vm1, %v162_v36  ;;  %v175_v0 = vld [vmem:[%s2165_s4 + $0xf0] sm:$0x3]  ;;  %v1372_v36 = vld [vmem:[%s2167_s2 + $0x8] sm:$0xff] }
  0x1a   :  { %1727 = vmatprep.subr.msk.mxu1 %vm753_vm1, %v164_v37  ;;  %1725 = vmatpush1.msk.msra.mxu0 %vm753_vm1, %v161_v38  ;;  %v1383_v38 = vrot.slane %v1371_v27, %v1382_v26 }
  0x1b   :  { %1728 = vmatpush1.msk.msra.mxu1 %vm753_vm1, %v163_v39  ;;  %832 = vmatprep.subr.mxu0 %v146_v40  ;;  %v1387_v39 = vrot.slane %v1371_v27, %v1386_v28  ;;  %v1391_v40 = vrot.slane %v1371_v27, %v1390_v29 }
  0x1c   :  { %903 = vmatprep.subr.mxu1 %v148_v41  ;;  %833 = vmatpush1.msra.mxu0 %v145_v42  ;;  %v1395_v41 = vrot.slane %v1371_v27, %v1394_v30  ;;  %v1399_v42 = vrot.slane %v1371_v27, %v1398_v31 }
  0x1d   :  { %866 = vmatprep.mubr.f32.mxu0 %v1753_v3  ;;  %904 = vmatpush1.msra.mxu1 %v147_v43  ;;  %v1403_v43 = vrot.slane %v1371_v27, %v1402_v32 }
  0x1e   :  { %937 = vmatprep.mubr.f32.mxu1 %v1753_v3  ;;  %1726 = vmatmul.mubr.msk.f32.vlgmr.msra.gmra.mxu0 %vm749_vm2, %v1944_v44 }
  0x1f   :  { %1729 = vmatmul.mubr.msk.f32.vlgmr.msra.gmra.mxu1 %vm749_vm2, %v1944_v44  ;;  %1730 = vmatprep.subr.msk.mxu0 %vm753_vm1, %v166_v45  ;;  %v1411_v45 = vrot.slane %v1371_v27, %v1410_v34 }
  0x20   :  { %1733 = vmatprep.subr.msk.mxu1 %vm753_vm1, %v168_v46  ;;  %1731 = vmatpush1.msk.msra.mxu0 %vm753_vm1, %v165_v47  ;;  %v2066_v46 = vrot.slane %v1372_v36, %v1382_v26 }
  0x21   :  { %1734 = vmatpush1.msk.msra.mxu1 %vm753_vm1, %v167_v48  ;;  %974 = vmatprep.subr.mxu0 %v150_v49  ;;  %v2070_v48 = vrot.slane %v1372_v36, %v1390_v29  ;;  %v2072_v49 = vrot.slane %v1372_v36, %v1386_v28 }
  0x22   :  { %1045 = vmatprep.subr.mxu1 %v152_v50  ;;  %975 = vmatpush1.msra.mxu0 %v149_v51  ;;  %v2074_v50 = vrot.slane %v1372_v36, %v1394_v30  ;;  %v2076_v51 = vrot.slane %v1372_v36, %v1398_v31 }
  0x23   :  { %1008 = vmatprep.mubr.f32.mxu0 %v1753_v3  ;;  %1046 = vmatpush1.msra.mxu1 %v151_v52 }
  0x24   :  { %1079 = vmatprep.mubr.f32.mxu1 %v1753_v3  ;;  %1732 = vmatmul.mubr.msk.f32.vlgmr.msra.gmra.mxu0 %vm749_vm2, %v1944_v44 }
  0x25   :  { %1735 = vmatmul.mubr.msk.f32.vlgmr.msra.gmra.mxu1 %vm749_vm2, %v1944_v44  ;;  %1736 = vmatprep.subr.msk.mxu0 %vm753_vm1, %v170_v53 }
  0x26   :  { %1739 = vmatprep.subr.msk.mxu1 %vm753_vm1, %v172_v54  ;;  %1737 = vmatpush1.msk.msra.mxu0 %vm753_vm1, %v169_v55  ;;  %v2080_v54 = vrot.slane %v1372_v36, %v1406_v33  ;;  %v2082_v55 = vrot.slane %v1372_v36, %v1402_v32 }
  0x27   :  { %1740 = vmatpush1.msk.msra.mxu1 %vm753_vm1, %v171_v56  ;;  %1116 = vmatprep.subr.mxu0 %v154_v57  ;;  %v2084_v56 = vrot.slane %v1372_v36, %v1410_v34 }
  0x28   :  { %1187 = vmatprep.subr.mxu1 %v156_v58  ;;  %1117 = vmatpush1.msra.mxu0 %v153_v59 }
  0x29   :  { %1150 = vmatprep.mubr.f32.mxu0 %v1753_v3  ;;  %1188 = vmatpush1.msra.mxu1 %v155_v60 }
  0x2a   :  { %1221 = vmatprep.mubr.f32.mxu1 %v1753_v3  ;;  %1738 = vmatmul.mubr.msk.f32.vlgmr.msra.gmra.mxu0 %vm749_vm2, %v1944_v44 }
  0x2b   :  { %1741 = vmatmul.mubr.msk.f32.vlgmr.msra.gmra.mxu1 %vm749_vm2, %v1944_v44  ;;  %1742 = vmatprep.subr.msk.mxu0 %vm753_vm1, %v174_v61 }
  0x2c   :  { %1745 = vmatprep.subr.msk.mxu1 %vm753_vm1, %v176_v62  ;;  %1743 = vmatpush1.msk.msra.mxu0 %vm753_vm1, %v173_v63 }
  0x2d   :  { %1746 = vmatpush1.msk.msra.mxu1 %vm753_vm1, %v175_v0  ;;  %1258 = vmatprep.subr.mxu0 %v158_v1 }
  0x2e   :  { %1329 = vmatprep.subr.mxu1 %v160_v2  ;;  %1259 = vmatpush1.msra.mxu0 %v157_v4 }
  0x2f   :  { %1292 = vmatprep.mubr.f32.mxu0 %v1753_v3  ;;  %1330 = vmatpush1.msra.mxu1 %v159_v5 }
  0x30   :  { %1363 = vmatprep.mubr.f32.mxu1 %v1753_v3  ;;  %1744 = vmatmul.mubr.msk.f32.vlgmr.msra.gmra.mxu0 %vm749_vm2, %v1944_v44 }
  0x31   :  { %1747 = vmatmul.mubr.msk.f32.vlgmr.msra.gmra.mxu1 %vm749_vm2, %v1944_v44  ;;  %1752 = vset.pattern.permute.xlu0 %v1754_v6  ;;  %v1407_v44 = vrot.slane %v1371_v27, %v1406_v33 }
  0x8e   :  { %v108_v7 = vpop.xlane.xlu0 %107 }
  0x8f   :  { %110 = vst.msk [vmem:[#allocation3] sm:$0xff] %vm109_vm3, %v108_v7 }
  0x96   :  { %v1370_v8 = vld [vmem:[#allocation3] sm:$0xff] }
  0x97   :  { %1375 = vperm.xlu0 %1752, %v1370_v8  }
  0xc6   :  { %v247_v9 = vpop.f32.mrf.mxu0 }
  0xc7   :  { %v318_v11 = vpop.f32.mrf.mxu1  ;;  %v1476_v52 = vmul.f32 2.0, %v247_v9 }
  0xc8   :  { %v249_v10 = vpop.f32.mrf.mxu0  ;;  %v1478_v57 = vmul.f32 2.0, %v318_v11 }
  0xc9   :  { %v320_v13 = vpop.f32.mrf.mxu1  ;;  %v1477_v58 = vmul.f32 2.0, %v249_v10 }
  0xca   :  { %v1479_v59 = vmul.f32 2.0, %v320_v13 }
  0xcc   :  { %v389_v12 = vpop.f32.mrf.mxu0 }
  0xcd   :  { %v460_v3 = vpop.f32.mrf.mxu1  ;;  %v1480_v60 = vmul.f32 2.0, %v389_v12 }
  0xce   :  { %v391_v14 = vpop.f32.mrf.mxu0  ;;  %v1482_v61 = vmul.f32 2.0, %v460_v3 }
  0xcf   :  { %v462_v16 = vpop.f32.mrf.mxu1  ;;  %v1481_v62 = vmul.f32 2.0, %v391_v14 }
  0xd0   :  { %v1483_v63 = vmul.f32 2.0, %v462_v16 }
  0xd2   :  { %v531_v15 = vpop.f32.mrf.mxu0 }
  0xd3   :  { %v602_v18 = vpop.f32.mrf.mxu1  ;;  %v2086_v0 = vmul.f32 2.0, %v531_v15 }
  0xd4   :  { %v533_v17 = vpop.f32.mrf.mxu0  ;;  %v2088_v1 = vmul.f32 2.0, %v602_v18 }
  0xd5   :  { %v604_v21 = vpop.f32.mrf.mxu1  ;;  %v2090_v2 = vmul.f32 2.0, %v533_v17 }
  0xd6   :  { %v2092_v4 = vmul.f32 2.0, %v604_v21 }
  0xd8   :  { %v673_v19 = vpop.f32.mrf.mxu0 }
  0xd9   :  { %v744_v24 = vpop.f32.mrf.mxu1  ;;  %v2094_v5 = vmul.f32 2.0, %v673_v19 }
  0xda   :  { %v675_v22 = vpop.f32.mrf.mxu0  ;;  %v2096_v7 = vmul.f32 2.0, %v744_v24 }
  0xdb   :  { %v2059_v35 = vpop.f32.mrf.mxu1  ;;  %v2098_v8 = vmul.f32 2.0, %v675_v22 }
  0xde   :  { %v2054_v25 = vpop.f32.mrf.mxu0 }
  0xdf   :  { %v2068_v47 = vpop.f32.mrf.mxu1  ;;  %vm1524_vm8 = vcmp.eq.f32.partialorder %v2054_v25, 0.0 }
  0xe0   :  { %v2064_v37 = vpop.f32.mrf.mxu0  ;;  %vm1526_vm4 = vcmp.eq.f32.partialorder %v2068_v47, 0.0 }
  0xe1   :  { %v941_v6 = vpop.f32.mrf.mxu1  ;;  %vm1525_vm9 = vcmp.eq.f32.partialorder %v2064_v37, 0.0 }
  0xe2   :  { %vm1527_vm5 = vcmp.eq.f32.partialorder %v941_v6, 0.0 }
  0xe4   :  { %v2078_v53 = vpop.f32.mrf.mxu0 }
  0xe5   :  { %vm1528_vm6 = vcmp.eq.f32.partialorder %v2078_v53, 0.0 }
  0xe6   :  { %v1012_v10 = vpop.f32.mrf.mxu0 }
  0xe7   :  { %vm1529_vm7 = vcmp.eq.f32.partialorder %v1012_v10, 0.0 }
 0x112   :  { %v2101_v9 = vpop.permute.xlu0 %1375 }
 0x113   :  { %v1460_v11 = vadd.f32 %v1383_v38, %v2101_v9  ;;  %v1461_v12 = vadd.f32 %v1387_v39, %v2101_v9  ;;  %v1462_v13 = vadd.f32 %v1391_v40, %v2101_v9  ;;  %v1463_v14 = vadd.f32 %v1395_v41, %v2101_v9  ;;  %v1081_v41 = vpop.f32.mrf.mxu1 }
 0x114   :  { %v1464_v3 = vadd.f32 %v1399_v42, %v2101_v9  ;;  %v1465_v15 = vadd.f32 %v1403_v43, %v2101_v9  ;;  %v1466_v16 = vadd.f32 %v1407_v44, %v2101_v9  ;;  %v1467_v17 = vadd.f32 %v1411_v45, %v2101_v9 }
 0x115   :  { %v1492_v18 = vsub.f32 %v1460_v11, %v1476_v52  ;;  %v1493_v19 = vsub.f32 %v1461_v12, %v1477_v58  ;;  %v1494_v20 = vsub.f32 %v1462_v13, %v1478_v57  ;;  %v1495_v21 = vsub.f32 %v1463_v14, %v1479_v59 }
 0x116   :  { %v1496_v22 = vsub.f32 %v1464_v3, %v1480_v60  ;;  %v1497_v23 = vsub.f32 %v1465_v15, %v1481_v62  ;;  %v1498_v24 = vsub.f32 %v1466_v16, %v1482_v61  ;;  %v1499_v26 = vsub.f32 %v1467_v17, %v1483_v63  ;;  %v2117_v60 = vpop.f32.mrf.mxu0 }
 0x117   :  { %v1508_v27 = vmax.f32 %v1492_v18, 0.0  ;;  %v1509_v28 = vmax.f32 %v1493_v19, 0.0  ;;  %v1510_v29 = vmax.f32 %v1494_v20, 0.0  ;;  %v1511_v30 = vmax.f32 %v1495_v21, 0.0  ;;  %v1083_v18 = vpop.f32.mrf.mxu1 }
 0x118   :  { %v1512_v31 = vmax.f32 %v1496_v22, 0.0  ;;  %v1513_v32 = vmax.f32 %v1497_v23, 0.0  ;;  %v1514_v33 = vmax.f32 %v1498_v24, 0.0  ;;  %v2114_v34 = vmax.f32 %v1499_v26, 0.0  ;;  %v1154_v37 = vpop.f32.mrf.mxu0 }
 0x119   :  { %v1540_v36 = vsub.f32 32.0, %v1508_v27  ;;  %v1541_v38 = vsub.f32 32.0, %v1509_v28  ;;  %v1542_v39 = vsub.f32 32.0, %v1510_v29  ;;  %v1543_v40 = vsub.f32 32.0, %v1511_v30 }
 0x11a   :  { %v1544_v42 = vsub.f32 32.0, %v1512_v31  ;;  %v1545_v43 = vsub.f32 32.0, %v1513_v32  ;;  %v1546_v44 = vsub.f32 32.0, %v1514_v33  ;;  %v1547_v45 = vsub.f32 32.0, %v2114_v34 }
 0x11b   :  { %v1556_v52 = vmax.f32 %v1540_v36, 0.0  ;;  %v1557_v57 = vmax.f32 %v1541_v38, 0.0  ;;  %v1558_v58 = vmax.f32 %v1542_v39, 0.0  ;;  %v1559_v59 = vmax.f32 %v1543_v40, 0.0  ;;  %v1223_v38 = vpop.f32.mrf.mxu1 }
 0x11c   :  { %vm1530_vm10 = vcmp.eq.f32.partialorder %v1081_v41, 0.0  ;;  %v1560_v61 = vmax.f32 %v1544_v42, 0.0  ;;  %v1561_v62 = vmax.f32 %v1545_v43, 0.0  ;;  %v1562_v63 = vmax.f32 %v1546_v44, 0.0 }
 0x11d   :  { %v1572_v11 = vsel %vm1524_vm8, %v1556_v52, %v1508_v27  ;;  %v1573_v12 = vsel %vm1525_vm9, %v1557_v57, %v1509_v28  ;;  %v1574_v13 = vsel %vm1526_vm4, %v1558_v58, %v1510_v29  ;;  %v1575_v14 = vsel %vm1527_vm5, %v1559_v59, %v1511_v30 }
 0x11e   :  { %v1576_v3 = vsel %vm1528_vm6, %v1560_v61, %v1512_v31  ;;  %v1577_v15 = vsel %vm1529_vm7, %v1561_v62, %v1513_v32  ;;  %v1588_v16 = vmul.f32 0.5, %v1572_v11  ;;  %v1589_v17 = vmul.f32 0.5, %v1573_v12  ;;  %v1225_v62 = vpop.f32.mrf.mxu1 }
 0x11f   :  { %v1590_v19 = vmul.f32 0.5, %v1574_v13  ;;  %vm1531_vm11 = vcmp.eq.f32.partialorder %v1083_v18, 0.0  ;;  %v1563_v25 = vmax.f32 %v1547_v45, 0.0  ;;  %vm1532_vm12 = vcmp.eq.f32.partialorder %v2117_v60, 0.0 }
 0x120   :  { %v1591_v20 = vmul.f32 0.5, %v1575_v14  ;;  %v1592_v21 = vmul.f32 0.5, %v1576_v3  ;;  %v1671_v47 = vadd.f32 %v1589_v17, %v1588_v16  ;;  %v1468_v6 = vadd.f32 %v2066_v46, %v2101_v9  ;;  %v1365_v60 = vpop.f32.mrf.mxu1 }
 0x121   :  { %vm1533_vm13 = vcmp.eq.f32.partialorder %v1154_v37, 0.0  ;;  %v1593_v53 = vmul.f32 0.5, %v1577_v15  ;;  %v1578_v10 = vsel %vm1530_vm10, %v1562_v63, %v1514_v33  ;;  %v1470_v22 = vadd.f32 %v2070_v48, %v2101_v9 }
 0x122   :  { %v1469_v23 = vadd.f32 %v2072_v49, %v2101_v9  ;;  %v1672_v24 = vadd.f32 %v1671_v47, %v1590_v19  ;;  %v1500_v26 = vsub.f32 %v1468_v6, %v2086_v0  ;;  %v1471_v27 = vadd.f32 %v2074_v50, %v2101_v9 }
 0x123   :  { %v1472_v28 = vadd.f32 %v2076_v51, %v2101_v9  ;;  %v1502_v46 = vsub.f32 %v1470_v22, %v2088_v1  ;;  %v1474_v30 = vadd.f32 %v2080_v54, %v2101_v9  ;;  %v1473_v48 = vadd.f32 %v2082_v55, %v2101_v9 }
 0x124   :  { %v1501_v29 = vsub.f32 %v1469_v23, %v2090_v2  ;;  %v1673_v49 = vadd.f32 %v1672_v24, %v1591_v20  ;;  %v1516_v31 = vmax.f32 %v1500_v26, 0.0  ;;  %v1503_v0 = vsub.f32 %v1471_v27, %v2092_v4  ;;  %v1367_v23 = vpop.f32.mrf.mxu1 }
 0x125   :  { %v1504_v32 = vsub.f32 %v1472_v28, %v2094_v5  ;;  %v1518_v50 = vmax.f32 %v1502_v46, 0.0  ;;  %v1506_v51 = vsub.f32 %v1474_v30, %v2096_v7  ;;  %v1505_v1 = vsub.f32 %v1473_v48, %v2098_v8  ;;  %v1294_v7 = vpop.f32.mrf.mxu0 }
 0x126   :  { %v1517_v33 = vmax.f32 %v1501_v29, 0.0  ;;  %v1674_v36 = vadd.f32 %v1673_v49, %v1592_v21  ;;  %v1548_v2 = vsub.f32 32.0, %v1516_v31  ;;  %v1519_v39 = vmax.f32 %v1503_v0, 0.0 }
 0x127   :  { %v1520_v54 = vmax.f32 %v1504_v32, 0.0  ;;  %v1579_v55 = vsel %vm1531_vm11, %v1563_v25, %v2114_v34  ;;  %v1550_v40 = vsub.f32 32.0, %v1518_v50  ;;  %v1521_v42 = vmax.f32 %v1505_v1, 0.0  ;;  %v1296_v17 = vpop.f32.mrf.mxu0 }
 0x128   :  { %v1549_v41 = vsub.f32 32.0, %v1517_v33  ;;  %v1675_v4 = vadd.f32 %v1674_v36, %v1593_v53  ;;  %v1594_v43 = vmul.f32 0.5, %v1578_v10  ;;  %v1564_v5 = vmax.f32 %v1548_v2, 0.0 }
 0x129   :  { %v1551_v44 = vsub.f32 32.0, %v1519_v39  ;;  %v1566_v45 = vmax.f32 %v1550_v40, 0.0  ;;  %v1552_v57 = vsub.f32 32.0, %v1520_v54  ;;  %v1522_v8 = vmax.f32 %v1506_v51, 0.0 }
 0x12a   :  { %v1565_v52 = vmax.f32 %v1549_v41, 0.0  ;;  %v1595_v58 = vmul.f32 0.5, %v1579_v55  ;;  %v1676_v59 = vadd.f32 %v1675_v4, %v1594_v43  ;;  %v1580_v61 = vsel %vm1532_vm12, %v1564_v5, %v1516_v31 }
 0x12b   :  { %vm1534_vm14 = vcmp.eq.f32.partialorder %v1223_v38, 0.0  ;;  %v1567_v63 = vmax.f32 %v1551_v44, 0.0  ;;  %v1553_v11 = vsub.f32 32.0, %v1521_v42  ;;  %v1491_v12 = vmul.f32 2.0, %v2059_v35 }
 0x12c   :  { %v1581_v34 = vsel %vm1533_vm13, %v1565_v52, %v1517_v33  ;;  %v1677_v13 = vadd.f32 %v1676_v59, %v1595_v58  ;;  %v1596_v14 = vmul.f32 0.5, %v1580_v61  ;;  %vm1535_vm15 = vcmp.eq.f32.partialorder %v1225_v62, 0.0 }
 0x12d   :  { %v1582_v3 = vsel %vm1534_vm14, %v1566_v45, %v1518_v50  ;;  %v1568_v15 = vmax.f32 %v1552_v57, 0.0  ;;  %v1554_v16 = vsub.f32 32.0, %v1522_v8  ;;  %v1597_v19 = vmul.f32 0.5, %v1581_v34 }
 0x12e   :  { %v1678_v18 = vadd.f32 %v1677_v13, %v1596_v14  ;;  %vm1536_vm0 = vcmp.eq.f32.partialorder %v1294_v7, 0.0  ;;  %v1475_v25 = vadd.f32 %v2084_v56, %v2101_v9  ;;  %v1583_v37 = vsel %vm1535_vm15, %v1567_v63, %v1519_v39 }
 0x12f   :  { %v1569_v20 = vmax.f32 %v1553_v11, 0.0  ;;  %v1598_v21 = vmul.f32 0.5, %v1582_v3  ;;  %vm1537_vm1 = vcmp.eq.f32.partialorder %v1296_v17, 0.0  ;;  %v1584_v6 = vsel %vm1536_vm0, %v1568_v15, %v1520_v54 }
 0x130   :  { %v1679_v47 = vadd.f32 %v1678_v18, %v1597_v19  ;;  %v1507_v35 = vsub.f32 %v1475_v25, %v1491_v12  ;;  %v1570_v53 = vmax.f32 %v1554_v16, 0.0  ;;  %v1599_v10 = vmul.f32 0.5, %v1583_v37 }
 0x131   :  { %vm1538_vm2 = vcmp.eq.f32.partialorder %v1365_v60, 0.0  ;;  %v1585_v26 = vsel %vm1537_vm1, %v1569_v20, %v1521_v42  ;;  %v1600_v28 = vmul.f32 0.5, %v1584_v6  ;;  %vm1539_vm3 = vcmp.eq.f32.partialorder %v1367_v23, 0.0 }
 0x132   :  { %v1680_v22 = vadd.f32 %v1679_v47, %v1598_v21  ;;  %v1523_v24 = vmax.f32 %v1507_v35, 0.0  ;;  %v1586_v29 = vsel %vm1538_vm2, %v1570_v53, %v1522_v8  ;;  %v1601_v9 = vmul.f32 0.5, %v1585_v26 }
 0x133   :  { %v1602_v48 = vmul.f32 0.5, %v1586_v29 }
 0x134   :  { %v1681_v27 = vadd.f32 %v1680_v22, %v1599_v10  ;;  %v1555_v46 = vsub.f32 32.0, %v1523_v24 }
 0x136   :  { %v1682_v56 = vadd.f32 %v1681_v27, %v1600_v28  ;;  %v1571_v30 = vmax.f32 %v1555_v46, 0.0 }
 0x138   :  { %v1587_v49 = vsel %vm1539_vm3, %v1571_v30, %v1523_v24  ;;  %v1683_v31 = vadd.f32 %v1682_v56, %v1601_v9 }
 0x139   :  { %v1603_v0 = vmul.f32 0.5, %v1587_v49 }
 0x13a   :  { %v1684_v32 = vadd.f32 %v1683_v31, %v1602_v48 }
 0x13c   :  { %v1685_v50 = vadd.f32 %v1684_v32, %v1603_v0 }
 0x13e   :  { %1686 = vadd.xlane.f32.xlu1 %v1685_v50 }
 0x1c7   :  { %v1687_v33 = vpop.xlane.xlu1 %1686 }
 0x1c8   :  { %v1688_v51 = vrot.slane %v1687_v33, 4 }
 0x1ca   :  { %v1689_v1 = vadd.f32 %v1688_v51, %v1687_v33 }
 0x1cc   :  { %v1690_v36 = vrot.slane %v1689_v1, 2 }
 0x1ce   :  { %v1691_v2 = vadd.f32 %v1690_v36, %v1689_v1 }
 0x1d0   :  { %v1692_v38 = vrot.slane %v1691_v2, 1 }
 0x1d2   :  { %v1693_v39 = vadd.f32 %v1692_v38, %v1691_v2 }
 0x1d4   :  { %1748 = vpush %v1693_v39 }
 0x205   :  { %s1749_s2 = spop %1748 }
 0x206   :  { %v1695_v54 = vstv %s1749_s2 }
 0x207   :  { %1696 = vst [vmem:[%s2168_s5] sm:$0x1] %v1695_v54 }

</bundles_post_ra>
